<compile_context>
chip_gen: v6e
topology: v6e:2x2x1
jax: 0.10.0
libtpu: 0.0.40
codegen_flags: <defaults>
</compile_context>

<pallas_src>
import jax
import jax.numpy as jnp
from jax.experimental import pallas as pl
from jax.experimental.pallas import tpu as pltpu

EPS = 1e-5
PAD = 128   # lane width for the param slab / w3 N-dim / final lane-dense store

# Row layout of the (80, 128) f32 parameter slab (one DMA for everything but w1/x):
#   rows  0:48  -> w2   (real lanes 0:24)
#   rows 48:72  -> w3   (real lanes 0:10, N padded to 128 for an unmasked final vst)
#   row  72     -> gamma1 (lanes 0:48)
#   row  73     -> beta1  (lanes 0:48)
#   row  74     -> gamma2 (lanes 0:24)
#   row  75     -> beta2  (lanes 0:24)
#   row  76     -> b3     (lanes 0:10)
#   rows 77:80  -> zero


def _linear_bn_kernel(x_ref, w1_ref, slab_ref, o_ref):
    # ---- layer 1: x @ w1 (bf16 MXU pass, f32 accumulate) ----
    x = x_ref[...].astype(jnp.bfloat16)                       # (B, 784)
    h = jnp.dot(x, w1_ref[...], preferred_element_type=jnp.float32)   # (B, 48) f32

    # small parameter views (static slices of the resident slab: zero-cost)
    w2 = slab_ref[0:48, 0:24]                                  # (48, 24) f32
    w3 = slab_ref[48:72, :]                                    # (24, 128) f32
    pv = slab_ref[72:80, :]                                    # (8, 128) f32
    g1, be1 = pv[0:1, 0:48], pv[1:2, 0:48]
    g2, be2 = pv[2:3, 0:24], pv[3:4, 0:24]
    b3 = pv[4:5, :]                                            # (1, 128)

    # ---- bn1 (training-mode batch stats, fused scale/shift) + relu ----
    mu = jnp.mean(h, axis=0, keepdims=True)
    var = jnp.maximum(jnp.mean(h * h, axis=0, keepdims=True) - mu * mu, 0.0)
    scale = g1 * jax.lax.rsqrt(var + EPS)
    shift = be1 - mu * scale
    h = jnp.maximum(h * scale + shift, 0.0)                    # (B, 48)

    # ---- layer 2 + bn2 + relu (tiny; f32 throughout) ----
    h = jnp.dot(h, w2, preferred_element_type=jnp.float32)     # (B, 24)
    mu = jnp.mean(h, axis=0, keepdims=True)
    var = jnp.maximum(jnp.mean(h * h, axis=0, keepdims=True) - mu * mu, 0.0)
    scale = g2 * jax.lax.rsqrt(var + EPS)
    shift = be2 - mu * scale
    h = jnp.maximum(h * scale + shift, 0.0)                    # (B, 24)

    # ---- layer 3: lane-dense 128-wide store; real logits live in lanes 0..9 ----
    o_ref[...] = (
        jnp.dot(h, w3, preferred_element_type=jnp.float32) + b3
    ).astype(o_ref.dtype)


def pack_params(p):
    """bf16 w1 at its true shape + one f32 (80, 128) slab for everything else."""
    w1 = p["w1"].astype(jnp.bfloat16)                          # (784, 48), no padding
    slab = jnp.zeros((80, PAD), jnp.float32)
    slab = slab.at[0:48, 0:24].set(p["w2"])
    slab = slab.at[48:72, 0:10].set(p["w3"])
    slab = slab.at[72, 0:48].set(p["g1"][0])
    slab = slab.at[73, 0:48].set(p["be1"][0])
    slab = slab.at[74, 0:24].set(p["g2"][0])
    slab = slab.at[75, 0:24].set(p["be2"][0])
    slab = slab.at[76, 0:10].set(p["b3"][0])
    return w1, slab


def linear_bn_forward(x_nchw, packed):
    w1, slab = packed
    B = x_nchw.shape[0]
    x = x_nchw.reshape(B, -1).astype(jnp.float32)              # (B, 784)

    args = (x, w1, slab)
    full = lambda a: pl.BlockSpec(a.shape, lambda: tuple(0 for _ in a.shape),
                                  memory_space=pltpu.VMEM)

    out_padded = pl.pallas_call(
        _linear_bn_kernel,
        out_shape=jax.ShapeDtypeStruct((B, PAD), jnp.float32),
        grid=(),
        in_specs=[full(a) for a in args],
        out_specs=pl.BlockSpec((B, PAD), lambda: (0, 0), memory_space=pltpu.VMEM),
        compiler_params=pltpu.CompilerParams(vmem_limit_bytes=4 * 1024 * 1024),
    )(*args)
    return out_padded[:, :10]


def init_params(key):
    """Deterministic init mimicking nn.Linear defaults (U(-1/sqrt(fan_in), +))."""
    ks = jax.random.split(key, 6)

    def lin(kw, kb, fan_in, fan_out):
        bound = 1.0 / jnp.sqrt(fan_in)
        w = jax.random.uniform(kw, (fan_in, fan_out), jnp.float32, -bound, bound)
        b = jax.random.uniform(kb, (1, fan_out), jnp.float32, -bound, bound)
        return w, b

    w1, b1 = lin(ks[0], ks[1], 784, 48)
    w2, b2 = lin(ks[2], ks[3], 48, 24)
    w3, b3 = lin(ks[4], ks[5], 24, 10)
    return {
        "w1": w1, "b1": b1,
        "g1": jnp.ones((1, 48), jnp.float32), "be1": jnp.zeros((1, 48), jnp.float32),
        "w2": w2, "b2": b2,
        "g2": jnp.ones((1, 24), jnp.float32), "be2": jnp.zeros((1, 24), jnp.float32),
        "w3": w3, "b3": b3,
    }


def reference_forward(x_nchw, p):
    """Pure-JAX f32 reference matching the PyTorch module (training-mode BN, with biases)."""
    x = x_nchw.reshape(x_nchw.shape[0], -1).astype(jnp.float32)

    def bn(h, g, be):
        mu = h.mean(0, keepdims=True)
        var = ((h - mu) ** 2).mean(0, keepdims=True)
        return (h - mu) / jnp.sqrt(var + EPS) * g + be

    h = x @ p["w1"] + p["b1"]
    h = jnp.maximum(bn(h, p["g1"], p["be1"]), 0.0)
    h = h @ p["w2"] + p["b2"]
    h = jnp.maximum(bn(h, p["g2"], p["be2"]), 0.0)
    return h @ p["w3"] + p["b3"]


if __name__ == "__main__":
    key = jax.random.PRNGKey(0)
    k_x, k_p = jax.random.split(key)

    x = jax.random.normal(k_x, (8, 1, 28, 28), jnp.float32)    # NCHW -> flattens to 784
    params = init_params(k_p)
    packed = pack_params(params)

    out = jax.block_until_ready(linear_bn_forward(x, packed))
    ref = reference_forward(x, params)

    assert out.shape == (8, 10)
    # Tolerance loosened from 1e-4: the first layer now uses bf16 x/w1 on the MXU
    # (f32 accumulation); everything downstream is f32.
    assert jnp.allclose(out, ref, atol=3e-2, rtol=3e-2), "mismatch vs JAX reference"
    print("KERNEL_OK")
</pallas_src>

<mosaic_0001>
module attributes {stable_mosaic.version = 11 : i64} {
  func.func @_linear_bn_kernel(%arg0: memref<8x784xf32, #tpu.memory_space<vmem>>, %arg1: memref<784x48xbf16, #tpu.memory_space<vmem>>, %arg2: memref<80x128xf32, #tpu.memory_space<vmem>>, %arg3: memref<8x128xf32, #tpu.memory_space<vmem>>) attributes {dimension_semantics = [], scalar_prefetch = 0 : i64, scratch_operands = 0 : i64, tpu.core_type = #tpu.core_type<tc>} {
    %c0 = arith.constant 0 : index
    %c0_0 = arith.constant 0 : index
    %0 = vector.load %arg0[%c0, %c0_0] : memref<8x784xf32, #tpu.memory_space<vmem>>, vector<8x784xf32>
    %1 = arith.truncf %0 : vector<8x784xf32> to vector<8x784xbf16>
    %c0_1 = arith.constant 0 : index
    %c0_2 = arith.constant 0 : index
    %2 = vector.load %arg1[%c0_1, %c0_2] : memref<784x48xbf16, #tpu.memory_space<vmem>>, vector<784x48xbf16>
    %cst = arith.constant dense<0.000000e+00> : vector<8x48xf32>
    %3 = tpu.matmul %1, %2, %cst {dimension_numbers = #tpu.dot_dimension_numbers<[1], [0], [0], [1], [0, 0, 1, 1], [], []>} : vector<8x784xbf16>, vector<784x48xbf16>, vector<8x48xf32> -> vector<8x48xf32>
    %c0_3 = arith.constant 0 : index
    %c0_4 = arith.constant 0 : index
    %4 = vector.load %arg2[%c0_3, %c0_4] : memref<80x128xf32, #tpu.memory_space<vmem>>, vector<48x24xf32>
    %c48 = arith.constant 48 : index
    %c0_5 = arith.constant 0 : index
    %5 = vector.load %arg2[%c48, %c0_5] : memref<80x128xf32, #tpu.memory_space<vmem>>, vector<24x128xf32>
    %c72 = arith.constant 72 : index
    %c0_6 = arith.constant 0 : index
    %6 = vector.load %arg2[%c72, %c0_6] : memref<80x128xf32, #tpu.memory_space<vmem>>, vector<8x128xf32>
    %7 = vector.extract_strided_slice %6 {offsets = [0, 0], sizes = [1, 48], strides = [1, 1]} : vector<8x128xf32> to vector<1x48xf32>
    %8 = vector.extract_strided_slice %6 {offsets = [1, 0], sizes = [1, 48], strides = [1, 1]} : vector<8x128xf32> to vector<1x48xf32>
    %9 = vector.extract_strided_slice %6 {offsets = [2, 0], sizes = [1, 24], strides = [1, 1]} : vector<8x128xf32> to vector<1x24xf32>
    %10 = vector.extract_strided_slice %6 {offsets = [3, 0], sizes = [1, 24], strides = [1, 1]} : vector<8x128xf32> to vector<1x24xf32>
    %11 = vector.extract_strided_slice %6 {offsets = [4, 0], sizes = [1, 128], strides = [1, 1]} : vector<8x128xf32> to vector<1x128xf32>
    %cst_7 = arith.constant dense<0.000000e+00> : vector<48xf32>
    %12 = vector.multi_reduction <add>, %3, %cst_7 [0] : vector<8x48xf32> to vector<48xf32>
    %13 = vector.shape_cast %12 : vector<48xf32> to vector<1x48xf32>
    %cst_8 = arith.constant 8.000000e+00 : f32
    %14 = vector.broadcast %cst_8 : f32 to vector<1x48xf32>
    %15 = arith.divf %13, %14 : vector<1x48xf32>
    %16 = arith.mulf %3, %3 : vector<8x48xf32>
    %cst_9 = arith.constant dense<0.000000e+00> : vector<48xf32>
    %17 = vector.multi_reduction <add>, %16, %cst_9 [0] : vector<8x48xf32> to vector<48xf32>
    %18 = vector.shape_cast %17 : vector<48xf32> to vector<1x48xf32>
    %cst_10 = arith.constant 8.000000e+00 : f32
    %19 = vector.broadcast %cst_10 : f32 to vector<1x48xf32>
    %20 = arith.divf %18, %19 : vector<1x48xf32>
    %21 = arith.mulf %15, %15 : vector<1x48xf32>
    %22 = arith.subf %20, %21 : vector<1x48xf32>
    %cst_11 = arith.constant 0.000000e+00 : f32
    %23 = vector.broadcast %cst_11 : f32 to vector<1x48xf32>
    %24 = arith.maximumf %22, %23 : vector<1x48xf32>
    %cst_12 = arith.constant 9.99999974E-6 : f32
    %25 = vector.broadcast %cst_12 : f32 to vector<1x48xf32>
    %26 = arith.addf %24, %25 : vector<1x48xf32>
    %27 = math.rsqrt %26 : vector<1x48xf32>
    %28 = arith.mulf %7, %27 : vector<1x48xf32>
    %29 = arith.mulf %15, %28 : vector<1x48xf32>
    %30 = arith.subf %8, %29 : vector<1x48xf32>
    %31 = vector.broadcast %28 : vector<1x48xf32> to vector<8x48xf32>
    %32 = arith.mulf %3, %31 : vector<8x48xf32>
    %33 = vector.broadcast %30 : vector<1x48xf32> to vector<8x48xf32>
    %34 = arith.addf %32, %33 : vector<8x48xf32>
    %cst_13 = arith.constant 0.000000e+00 : f32
    %35 = vector.broadcast %cst_13 : f32 to vector<8x48xf32>
    %36 = arith.maximumf %34, %35 : vector<8x48xf32>
    %cst_14 = arith.constant dense<0.000000e+00> : vector<8x24xf32>
    %37 = tpu.matmul %36, %4, %cst_14 {dimension_numbers = #tpu.dot_dimension_numbers<[1], [0], [0], [1], [0, 0, 1, 1], [], []>} : vector<8x48xf32>, vector<48x24xf32>, vector<8x24xf32> -> vector<8x24xf32>
    %cst_15 = arith.constant dense<0.000000e+00> : vector<24xf32>
    %38 = vector.multi_reduction <add>, %37, %cst_15 [0] : vector<8x24xf32> to vector<24xf32>
    %39 = vector.shape_cast %38 : vector<24xf32> to vector<1x24xf32>
    %cst_16 = arith.constant 8.000000e+00 : f32
    %40 = vector.broadcast %cst_16 : f32 to vector<1x24xf32>
    %41 = arith.divf %39, %40 : vector<1x24xf32>
    %42 = arith.mulf %37, %37 : vector<8x24xf32>
    %cst_17 = arith.constant dense<0.000000e+00> : vector<24xf32>
    %43 = vector.multi_reduction <add>, %42, %cst_17 [0] : vector<8x24xf32> to vector<24xf32>
    %44 = vector.shape_cast %43 : vector<24xf32> to vector<1x24xf32>
    %cst_18 = arith.constant 8.000000e+00 : f32
    %45 = vector.broadcast %cst_18 : f32 to vector<1x24xf32>
    %46 = arith.divf %44, %45 : vector<1x24xf32>
    %47 = arith.mulf %41, %41 : vector<1x24xf32>
    %48 = arith.subf %46, %47 : vector<1x24xf32>
    %cst_19 = arith.constant 0.000000e+00 : f32
    %49 = vector.broadcast %cst_19 : f32 to vector<1x24xf32>
    %50 = arith.maximumf %48, %49 : vector<1x24xf32>
    %cst_20 = arith.constant 9.99999974E-6 : f32
    %51 = vector.broadcast %cst_20 : f32 to vector<1x24xf32>
    %52 = arith.addf %50, %51 : vector<1x24xf32>
    %53 = math.rsqrt %52 : vector<1x24xf32>
    %54 = arith.mulf %9, %53 : vector<1x24xf32>
    %55 = arith.mulf %41, %54 : vector<1x24xf32>
    %56 = arith.subf %10, %55 : vector<1x24xf32>
    %57 = vector.broadcast %54 : vector<1x24xf32> to vector<8x24xf32>
    %58 = arith.mulf %37, %57 : vector<8x24xf32>
    %59 = vector.broadcast %56 : vector<1x24xf32> to vector<8x24xf32>
    %60 = arith.addf %58, %59 : vector<8x24xf32>
    %cst_21 = arith.constant 0.000000e+00 : f32
    %61 = vector.broadcast %cst_21 : f32 to vector<8x24xf32>
    %62 = arith.maximumf %60, %61 : vector<8x24xf32>
    %cst_22 = arith.constant dense<0.000000e+00> : vector<8x128xf32>
    %63 = tpu.matmul %62, %5, %cst_22 {dimension_numbers = #tpu.dot_dimension_numbers<[1], [0], [0], [1], [0, 0, 1, 1], [], []>} : vector<8x24xf32>, vector<24x128xf32>, vector<8x128xf32> -> vector<8x128xf32>
    %64 = vector.broadcast %11 : vector<1x128xf32> to vector<8x128xf32>
    %65 = arith.addf %63, %64 : vector<8x128xf32>
    %c0_23 = arith.constant 0 : index
    %c0_24 = arith.constant 0 : index
    %66 = vector.load %arg3[%c0_23, %c0_24] : memref<8x128xf32, #tpu.memory_space<vmem>>, vector<8x128xf32>
    tpu.vector_store %arg3[%c0_23, %c0_24], %65 {strides = array<i32>} : memref<8x128xf32, #tpu.memory_space<vmem>>, vector<8x128xf32>,
    return
  }
}

</mosaic_0001>

<bundles_post_ra>
// kernel: tpu_custom_call.1
= control target key start
LH: loop header
LB: loop body
LE: loop exit
PB: predicated region body
PF: predicated region fallthrough
CT: control target
= control target key end

     0   :  { %v1081_v41 = vmov 0.0   ;;  %vm1082_vm0 = vmmov 0   ;;  %s1334_s0 = inlined_call_operand.vmem [shape: f32[8,784], index: 0, kind: input, shape index: {}]   ;;  %s1335_s1 = inlined_call_operand.vmem [shape: bf16[784,48], index: 1, kind: input, shape index: {}]   ;;  %s1336_s2 = inlined_call_operand.vmem [shape: f32[80,128], index: 2, kind: input, shape index: {}]   ;;  %s1337_s3 = inlined_call_operand.hbm [shape: f32[8,128], index: 3, kind: output, shape index: {}]  }
   0x1   :  { %v1006_v0 = vld [vmem:[%s1335_s1 + $0x78] sm:$0xff]   ;;  %v1010_v4 = vld [vmem:[%s1335_s1 + $0x70] sm:$0xff]   ;;  %v1014_v8 = vld [vmem:[%s1335_s1 + $0x68] sm:$0xff]  }
   0x2   :  { %v1007_v1 = vld [vmem:[%s1335_s1 + $0xf8] sm:$0xff]   ;;  %894 = vmatprep.subr.bf16.mxu0 %v1006_v0  ;;  %v1011_v5 = vld [vmem:[%s1335_s1 + $0xf0] sm:$0xff]   ;;  %v1015_v9 = vld [vmem:[%s1335_s1 + $0xe8] sm:$0xff]  }
   0x3   :  { %v1008_v2 = vld [vmem:[%s1335_s1 + $0x38] sm:$0xff]   ;;  %916 = vmatprep.subr.bf16.mxu1 %v1007_v1  ;;  %v1012_v6 = vld [vmem:[%s1335_s1 + $0x30] sm:$0xff]   ;;  %v1016_v10 = vld [vmem:[%s1335_s1 + $0x28] sm:$0xff]  }
   0x4   :  { %v1009_v3 = vld [vmem:[%s1335_s1 + $0xb8] sm:$0xff]   ;;  %895 = vmatpush3.bf16.msra.mxu0 %v1008_v2  ;;  %v1013_v7 = vld [vmem:[%s1335_s1 + $0xb0] sm:$0xff]   ;;  %v1017_v11 = vld [vmem:[%s1335_s1 + $0xa8] sm:$0xff]  }
   0x5   :  { %917 = vmatpush3.bf16.msra.mxu1 %v1009_v3  ;;  %896 = vmatprep.subr.bf16.mxu0 %v1010_v4  ;;  %v1018_v12 = vld [vmem:[%s1335_s1 + $0x60] sm:$0xff]   ;;  %v1022_v16 = vld [vmem:[%s1335_s1 + $0x58] sm:$0xff]   ;;  %v1026_v20 = vld [vmem:[%s1335_s1 + $0x50] sm:$0xff]  }
   0x6   :  { %918 = vmatprep.subr.bf16.mxu1 %v1011_v5  ;;  %v1019_v13 = vld [vmem:[%s1335_s1 + $0xe0] sm:$0xff]   ;;  %v1023_v17 = vld [vmem:[%s1335_s1 + $0xd8] sm:$0xff]   ;;  %v1027_v21 = vld [vmem:[%s1335_s1 + $0xd0] sm:$0xff]  }
   0x7   :  { %v1020_v14 = vld [vmem:[%s1335_s1 + $0x20] sm:$0xff]   ;;  %v1024_v18 = vld [vmem:[%s1335_s1 + $0x18] sm:$0xff]   ;;  %v1028_v22 = vld [vmem:[%s1335_s1 + $0x10] sm:$0xff]  }
   0x8   :  { %897 = vmatpush3.bf16.msra.mxu0 %v1012_v6  ;;  %v1021_v15 = vld [vmem:[%s1335_s1 + $0xa0] sm:$0xff]   ;;  %v1025_v19 = vld [vmem:[%s1335_s1 + $0x98] sm:$0xff]   ;;  %v1029_v23 = vld [vmem:[%s1335_s1 + $0x90] sm:$0xff]  }
   0x9   :  { %919 = vmatpush3.bf16.msra.mxu1 %v1013_v7  ;;  %898 = vmatprep.subr.bf16.mxu0 %v1014_v8  ;;  %v1030_v24 = vld [vmem:[%s1335_s1 + $0x48] sm:$0xff]   ;;  %v1034_v28 = vld [vmem:[%s1335_s1 + $0x40] sm:$0xff]   ;;  %v19_v33 = vld [vmem:[%s1334_s0 + $0x18] sm:$0xff] }
   0xa   :  { %920 = vmatprep.subr.bf16.mxu1 %v1015_v9  ;;  %v1031_v25 = vld [vmem:[%s1335_s1 + $0xc8] sm:$0xff]   ;;  %v1035_v29 = vld [vmem:[%s1335_s1 + $0xc0] sm:$0xff]   ;;  %v26_v36 = vpack.c.bf16 %v19_v33, %v19_v33  ;;  %v18_v38 = vld [vmem:[%s1334_s0 + $0x10] sm:$0xff] }
   0xb   :  { %v1032_v26 = vld [vmem:[%s1335_s1 + $0x8] sm:$0xff]   ;;  %v1036_v30 = vld [vmem:[%s1335_s1] sm:$0xff]   ;;  %v25_v39 = vpack.c.bf16 %v18_v38, %v18_v38  ;;  %v1038_v40 = vld [vmem:[%s1335_s1 + $0x178] sm:$0xff]  }
   0xc   :  { %899 = vmatpush3.bf16.msra.mxu0 %v1016_v10  ;;  %v1033_v27 = vld [vmem:[%s1335_s1 + $0x88] sm:$0xff]   ;;  %v1037_v31 = vld [vmem:[%s1335_s1 + $0x80] sm:$0xff]   ;;  %498 = vmatprep.mubr.bf16.mxu1 %v26_v36  ;;  %v1039_v42 = vld [vmem:[%s1335_s1 + $0x138] sm:$0xff]  }
   0xd   :  { %921 = vmatpush3.bf16.msra.mxu1 %v1017_v11  ;;  %900 = vmatprep.subr.bf16.mxu0 %v1018_v12  ;;  %v17_v32 = vld [vmem:[%s1334_s0 + $0x8] sm:$0xff]  ;;  %v16_v34 = vld [vmem:[%s1334_s0] sm:$0xff]  ;;  %v1040_v43 = vld [vmem:[%s1335_s1 + $0x170] sm:$0xff]  }
   0xe   :  { %922 = vmatprep.subr.bf16.mxu1 %v1019_v13  ;;  %v24_v35 = vpack.c.bf16 %v17_v32, %v17_v32  ;;  %v23_v37 = vpack.c.bf16 %v16_v34, %v16_v34  ;;  %v1041_v44 = vld [vmem:[%s1335_s1 + $0x130] sm:$0xff]   ;;  %v1042_v45 = vld [vmem:[%s1335_s1 + $0x168] sm:$0xff]   ;;  %v1044_v47 = vld [vmem:[%s1335_s1 + $0x160] sm:$0xff]  }
   0xf   :  { %v1043_v46 = vld [vmem:[%s1335_s1 + $0x128] sm:$0xff]   ;;  %v1045_v48 = vld [vmem:[%s1335_s1 + $0x120] sm:$0xff]   ;;  %v1046_v49 = vld [vmem:[%s1335_s1 + $0x158] sm:$0xff]  }
  0x10   :  { %901 = vmatpush3.bf16.msra.mxu0 %v1020_v14  ;;  %458 = vmatprep.mubr.bf16.mxu0 %v24_v35  ;;  %v1047_v50 = vld [vmem:[%s1335_s1 + $0x118] sm:$0xff]   ;;  %v1054_v51 = vld [vmem:[%s1335_s1 + $0x180] sm:$0xff]   ;;  %v21_v52 = vld [vmem:[%s1334_s0 + $0x28] sm:$0xff] }
  0x11   :  { %923 = vmatpush3.bf16.msra.mxu1 %v1021_v15  ;;  %902 = vmatprep.subr.bf16.mxu0 %v1022_v16  ;;  %v1048_v53 = vld [vmem:[%s1335_s1 + $0x150] sm:$0xff]   ;;  %v28_v54 = vpack.c.bf16 %v21_v52, %v21_v52 }
  0x12   :  { %924 = vmatprep.subr.bf16.mxu1 %v1023_v17  ;;  %v22_v55 = vld [vmem:[%s1334_s0 + $0x30] sm:$0xff] }
  0x14   :  { %903 = vmatpush3.bf16.msra.mxu0 %v1024_v18 }
  0x15   :  { %925 = vmatpush3.bf16.msra.mxu1 %v1025_v19  ;;  %904 = vmatprep.subr.bf16.mxu0 %v1026_v20 }
  0x16   :  { %926 = vmatprep.subr.bf16.mxu1 %v1027_v21 }
  0x18   :  { %905 = vmatpush3.bf16.msra.mxu0 %v1028_v22 }
  0x19   :  { %927 = vmatpush3.bf16.msra.mxu1 %v1029_v23  ;;  %906 = vmatprep.subr.bf16.mxu0 %v1030_v24 }
  0x1a   :  { %928 = vmatprep.subr.bf16.mxu1 %v1031_v25 }
  0x1c   :  { %907 = vmatpush3.bf16.msra.mxu0 %v1032_v26 }
  0x1d   :  { %929 = vmatpush3.bf16.msra.mxu1 %v1033_v27  ;;  %908 = vmatprep.subr.bf16.mxu0 %v1034_v28 }
  0x1e   :  { %930 = vmatprep.subr.bf16.mxu1 %v1035_v29 }
  0x20   :  { %909 = vmatpush3.bf16.msra.mxu0 %v1036_v30 }
  0x21   :  { %931 = vmatpush3.bf16.msra.mxu1 %v1037_v31  ;;  %938 = vmatprep.subr.bf16.mxu0 %v1038_v40 }
  0x22   :  { %973 = vmatprep.subr.bf16.mxu1 %v1081_v41 }
  0x23   :  { %459 = vmatmul.mubr.bf16.vlgmr.msra.gmra.mxu0 %v23_v37 }
  0x24   :  { %499 = vmatmul.mubr.bf16.vlgmr.msra.gmra.mxu1 %v25_v39  ;;  %939 = vmatpush3.bf16.msra.mxu0 %v1039_v42 }
  0x25   :  { %975 = vmatprep.mubr.msk.bf16.mxu1 %vm1082_vm0, %v1081_v41  ;;  %940 = vmatprep.subr.bf16.mxu0 %v1040_v43 }
  0x28   :  { %941 = vmatpush3.bf16.msra.mxu0 %v1041_v44 }
  0x29   :  { %942 = vmatprep.subr.bf16.mxu0 %v1042_v45 }
  0x2c   :  { %943 = vmatpush3.bf16.msra.mxu0 %v1043_v46 }
  0x2d   :  { %944 = vmatprep.subr.bf16.mxu0 %v1044_v47 }
  0x30   :  { %945 = vmatpush3.bf16.msra.mxu0 %v1045_v48 }
  0x31   :  { %946 = vmatprep.subr.bf16.mxu0 %v1046_v49 }
  0x32   :  { %8 = vsyncpa [#allocation3], 0  ;;  %974 = vmatpush3.bf16.msra.mxu1 %v1054_v51  ;;  %v29_v56 = vpack.c.bf16 %v22_v55, %v22_v55  ;;  %vm422_vm1 = vcmask 130048   ;;  %538 = vmatprep.mubr.bf16.mxu0 %v28_v54  ;;  %v1049_v57 = vld [vmem:[%s1335_s1 + $0x110] sm:$0xff]   ;;  %v1050_v58 = vld [vmem:[%s1335_s1 + $0x148] sm:$0xff]   ;;  %vm596_vm2 = vcmask 392192  }
  0x33   :  { %979 = vmatprep.subr.mxu1 %v1081_v41  ;;  %v1051_v59 = vld [vmem:[%s1335_s1 + $0x108] sm:$0xff]   ;;  %v1052_v60 = vld [vmem:[%s1335_s1 + $0x140] sm:$0xff]   ;;  %v589_v2 = vld [vmem:[%s1336_s2 + $0x18] sm:$0xff]  ;;  %vm710_vm3 = vcmask 195584  }
  0x34   :  { %947 = vmatpush3.bf16.msra.mxu0 %v1047_v50  ;;  %v1053_v61 = vld [vmem:[%s1335_s1 + $0x100] sm:$0xff]   ;;  %v591_v0 = vld [vmem:[%s1336_s2 + $0x28] sm:$0xff]  ;;  %v588_v3 = vld [vmem:[%s1336_s2 + $0x10] sm:$0xff]  ;;  %v626_v50 = vlaneseq }
  0x35   :  { %948 = vmatprep.subr.bf16.mxu0 %v1048_v53  ;;  %976 = vmatmul.mubr.msk.bf16.vlgmr.msra.gmra.mxu1 %vm422_vm1, %v29_v56  ;;  %v20_v62 = vld [vmem:[%s1334_s0 + $0x20] sm:$0xff]  ;;  %v587_v4 = vld [vmem:[%s1336_s2 + $0x8] sm:$0xff] }
  0x36   :  { %991 = vmatprep.mubr.msk.f32.mxu1 %vm1082_vm0, %v1081_v41  ;;  %v27_v63 = vpack.c.bf16 %v20_v62, %v20_v62  ;;  %v590_v1 = vld [vmem:[%s1336_s2 + $0x20] sm:$0xff]  ;;  %980 = vmatpush3.msra.mxu1 %v591_v0  ;;  %v1304_v51 = vshrl.u32 %v626_v50, 7  ;;  %v595_v52 = vld [vmem:[%s1336_s2 + $0x48] sm:$0xff] }
  0x37   :  { %981 = vmatprep.subr.mxu1 %v1081_v41  ;;  %v586_v5 = vld [vmem:[%s1336_s2] sm:$0xff] }
  0x38   :  { %949 = vmatpush3.bf16.msra.mxu0 %v1049_v57  ;;  %982 = vmatpush3.msra.mxu1 %v590_v1  ;;  %v628_v55 = vsub.s32 0, %v1304_v51  ;;  %v594_v1 = vld [vmem:[%s1336_s2 + $0x40] sm:$0xff] }
  0x39   :  { %950 = vmatprep.subr.bf16.mxu0 %v1050_v58  ;;  %983 = vmatprep.subr.mxu1 %v1081_v41 }
  0x3a   :  { %984 = vmatpush3.msra.mxu1 %v589_v2  ;;  %v593_v2 = vld [vmem:[%s1336_s2 + $0x38] sm:$0xff] }
  0x3b   :  { %985 = vmatprep.subr.mxu1 %v1081_v41 }
  0x3c   :  { %951 = vmatpush3.bf16.msra.mxu0 %v1051_v59  ;;  %986 = vmatpush3.msra.mxu1 %v588_v3  ;;  %v633_v59 = vsub.s32 1, %v1304_v51  ;;  %v592_v3 = vld [vmem:[%s1336_s2 + $0x30] sm:$0xff]  ;;  %s1083_s2 = smov [#allocation2]  }
  0x3d   :  { %952 = vmatprep.subr.bf16.mxu0 %v1052_v60  ;;  %987 = vmatprep.subr.mxu1 %v1081_v41  ;;  %s834_s7 = sshll.u32 %s1083_s2, 4  ;;  %s835_s7 = int_to_ptr.vmem [resolvable:$true] %s834_s7 }
  0x3e   :  { %988 = vmatpush3.msra.mxu1 %v587_v4  ;;  %s1059_s8 = scalar_lea.vmem %s835_s7, 128  ;;  %p1064_p1 = scmp.lt.s32.totalorder %s835_s7, %s835_s7 }
  0x3f   :  { %989 = vmatprep.subr.mxu1 %v1081_v41  ;;  %p1060_p0 = scmp.ne.s32.totalorder %s835_s7, %s1059_s8  ;;  %p1065_p2 = scmp.lt.s32.totalorder %s1059_s8, %s1059_s8 }
  0x40   :  { %953 = vmatpush3.bf16.msra.mxu0 %v1053_v61  ;;  %990 = vmatpush3.msra.mxu1 %v586_v5 }
  0x41   :  { %994 = vmatprep.subr.mxu1 %v1081_v41  ;;  %p1066_p3 = por %p1065_p2, %p1064_p1 }
  0x43   :  { %539 = vmatmul.mubr.bf16.vlgmr.msra.gmra.mxu0 %v27_v63  ;;  %p1067_p4 = pnand %p1066_p3, %p1060_p0 }
  0xe3   :  { %v910_v6 = vpop.f32.mrf.mxu0 }
  0xe4   :  { %v932_v7 = vpop.f32.mrf.mxu1 }
  0xe5   :  { %v911_v8 = vpop.f32.mrf.mxu0 }
  0xe6   :  { %v933_v9 = vpop.f32.mrf.mxu1  ;;  %v912_v18 = vadd.f32 %v911_v8, %v910_v6 }
  0xe7   :  { %v913_v10 = vpop.f32.mrf.mxu0  ;;  %v934_v19 = vadd.f32 %v933_v9, %v932_v7 }
  0xe8   :  { %v935_v11 = vpop.f32.mrf.mxu1 }
  0xe9   :  { %v914_v12 = vpop.f32.mrf.mxu0  ;;  %v501_v22 = vadd.f32 %v934_v19, %v912_v18 }
  0xea   :  { %v936_v13 = vpop.f32.mrf.mxu1 }
  0xf5   :  { %v580_v14 = vpop.f32.mrf.mxu1 }
  0xf7   :  { %v977_v15 = vpop.f32.mrf.mxu1 }
  0xf9   :  { %v583_v16 = vpop.f32.mrf.mxu1 }
  0xfb   :  { %v978_v17 = vpop.f32.mrf.mxu1 }
 0x103   :  { %v954_v20 = vpop.f32.mrf.mxu0 }
 0x105   :  { %v955_v21 = vpop.f32.mrf.mxu0 }
 0x106   :  { %v956_v23 = vadd.f32 %v955_v21, %v954_v20 }
 0x107   :  { %v957_v24 = vpop.f32.mrf.mxu0 }
 0x108   :  { %v541_v25 = vadd.f32 %v956_v23, %v501_v22 }
 0x109   :  { %v958_v26 = vpop.f32.mrf.mxu0 }
 0x10a   :  { %v581_v27 = vadd.f32 %v580_v14, %v541_v25 }
 0x10c   :  { %v606_v28 = vmul.f32 %v581_v27, %v581_v27  ;;  %v597_v29 = vsel %vm596_vm2, %v581_v27, 0.0 }
 0x10d   :  { %v598_v30 = vrot.slane %v597_v29, 4 }
 0x10e   :  { %v607_v31 = vsel %vm596_vm2, %v606_v28, 0.0  ;;  %v741_v28 = vsub.s32 2, %v1304_v51 }
 0x10f   :  { %v599_v32 = vadd.f32 %v598_v30, %v597_v29  ;;  %v608_v33 = vrot.slane %v607_v31, 4 }
 0x111   :  { %v600_v34 = vrot.slane %v599_v32, 2  ;;  %v609_v35 = vadd.f32 %v608_v33, %v607_v31 }
 0x113   :  { %v601_v36 = vadd.f32 %v600_v34, %v599_v32  ;;  %v610_v37 = vrot.slane %v609_v35, 2  ;;  %v746_v32 = vsub.s32 3, %v1304_v51 }
 0x115   :  { %v602_v38 = vrot.slane %v601_v36, 1  ;;  %v611_v39 = vadd.f32 %v610_v37, %v609_v35 }
 0x117   :  { %v603_v40 = vadd.f32 %v602_v38, %v601_v36  ;;  %v612_v42 = vrot.slane %v611_v39, 1  ;;  %v752_v38 = vsub.s32 4, %v1304_v51 }
 0x119   :  { %v605_v43 = vmul.f32 0.125, %v603_v40  ;;  %v613_v44 = vadd.f32 %v612_v42, %v611_v39  ;;  %v753_v39 = vrot.slane %v595_v52, %v752_v38 }
 0x11b   :  { %v614_v45 = vmul.f32 0.125, %v613_v44  ;;  %v615_v46 = vmul.f32 %v605_v43, %v605_v43 }
 0x11d   :  { %v616_v47 = vsub.f32 %v614_v45, %v615_v46 }
 0x11f   :  { %v617_v48 = vmax.f32 %v616_v47, 0.0 }
 0x121   :  { %v618_v49 = vadd.f32 1e-05, %v617_v48 }
 0x123   :  { %1055 = vrsqrt.f32 %v618_v49 }
 0x130   :  { %v1056_v53 = vpop.eup %1055 }
 0x131   :  { %v620_v54 = vmul.f32 %v1056_v53, %v595_v52 }
 0x133   :  { %v621_v56 = vmul.f32 %v620_v54, %v605_v43  ;;  %v629_v58 = vrot.slane %v620_v54, %v628_v55 }
 0x135   :  { %v623_v57 = vrot.slane %v621_v56, 7  ;;  %v630_v61 = vmul.f32 %v629_v58, %v581_v27 }
 0x137   :  { %v625_v60 = vsub.f32 %v595_v52, %v623_v57 }
 0x139   :  { %v634_v62 = vrot.slane %v625_v60, %v633_v59 }
 0x13b   :  { %v635_v63 = vadd.f32 %v634_v62, %v630_v61 }
 0x13d   :  { %v636_v0 = vmax.f32 %v635_v63, 0.0 }
 0x13f   :  { %992 = vmatmul.mubr.msk.f32.vlgmr.msra.gmra.mxu1 %vm596_vm2, %v636_v0 }
 0x140   :  { %1000 = vmatprep.mubr.msk.f32.mxu1 %vm1082_vm0, %v1081_v41  ;;  %995 = vmatpush3.msra.mxu1 %v594_v1 }
 0x141   :  { %996 = vmatprep.subr.mxu1 %v1081_v41 }
 0x142   :  { %997 = vmatpush3.msra.mxu1 %v593_v2 }
 0x143   :  { %998 = vmatprep.subr.mxu1 %v1081_v41 }
 0x144   :  { %999 = vmatpush3.msra.mxu1 %v592_v3 }
 0x1ff   :  { %v706_v4 = vpop.f32.mrf.mxu1 }
 0x200   :  { %v711_v5 = vsel %vm710_vm3, %v706_v4, 0.0  ;;  %v719_v6 = vmul.f32 %v706_v4, %v706_v4 }
 0x201   :  { %v712_v7 = vrot.slane %v711_v5, 4  ;;  %v993_v8 = vpop.f32.mrf.mxu1 }
 0x202   :  { %v720_v9 = vsel %vm710_vm3, %v719_v6, 0.0 }
 0x203   :  { %v713_v10 = vadd.f32 %v712_v7, %v711_v5  ;;  %v721_v11 = vrot.slane %v720_v9, 4 }
 0x205   :  { %v714_v12 = vrot.slane %v713_v10, 2  ;;  %v722_v13 = vadd.f32 %v721_v11, %v720_v9 }
 0x207   :  { %v715_v14 = vadd.f32 %v714_v12, %v713_v10  ;;  %v723_v41 = vrot.slane %v722_v13, 2 }
 0x209   :  { %v716_v15 = vrot.slane %v715_v14, 1  ;;  %v724_v16 = vadd.f32 %v723_v41, %v722_v13 }
 0x20b   :  { %v717_v17 = vadd.f32 %v716_v15, %v715_v14  ;;  %v725_v18 = vrot.slane %v724_v16, 1 }
 0x20d   :  { %v718_v19 = vmul.f32 0.125, %v717_v17  ;;  %v726_v20 = vadd.f32 %v725_v18, %v724_v16 }
 0x20f   :  { %v727_v21 = vmul.f32 0.125, %v726_v20  ;;  %v728_v22 = vmul.f32 %v718_v19, %v718_v19 }
 0x211   :  { %v729_v23 = vsub.f32 %v727_v21, %v728_v22 }
 0x213   :  { %v730_v24 = vmax.f32 %v729_v23, 0.0 }
 0x215   :  { %v731_v25 = vadd.f32 1e-05, %v730_v24 }
 0x217   :  { %1057 = vrsqrt.f32 %v731_v25 }
 0x224   :  { %v1058_v26 = vpop.eup %1057 }
 0x225   :  { %v733_v27 = vmul.f32 %v1058_v26, %v595_v52 }
 0x227   :  { %v734_v29 = vmul.f32 %v733_v27, %v718_v19  ;;  %v742_v31 = vrot.slane %v733_v27, %v741_v28 }
 0x229   :  { %v736_v30 = vrot.slane %v734_v29, 7  ;;  %v743_v34 = vmul.f32 %v742_v31, %v706_v4 }
 0x22b   :  { %v738_v33 = vsub.f32 %v595_v52, %v736_v30 }
 0x22d   :  { %v747_v35 = vrot.slane %v738_v33, %v746_v32 }
 0x22f   :  { %v748_v36 = vadd.f32 %v747_v35, %v743_v34 }
 0x231   :  { %v749_v37 = vmax.f32 %v748_v36, 0.0 }
 0x233   :  { %1001 = vmatmul.mubr.msk.f32.vlgmr.msra.gmra.mxu1 %vm710_vm3, %v749_v37 }
 0x2f3   :  { %v823_v40 = vpop.f32.mrf.mxu1 }
 0x2f4   :  { %v824_v42 = vadd.f32 %v823_v40, %v753_v39 }
 0x2f5   :  { %v1002_v43 = vpop.f32.mrf.mxu1 }
 0x2f6   :  { %827 = vst [vmem:[#allocation2] sm:$0xff] %v824_v42 }
 0x2f7   :  { %1070 = shalt.err (!%p1067_p4)
}
 0x2f8   :  { %837 = dma.vmem_to_hbm [thread:$0]  %s835_s7, 128, %s1337_s3, [#allocation3]  }
 0x2f9   :  { %1079 = dma.done.wait [#allocation3], 128  }
 0x2fa   :  { %1080 = vsyncadd [#allocation3], 4294967168 }
 0x2fb   :  { %841 = vsyncpa [#allocation3], 1 }

</bundles_post_ra>
